<compile_context>
chip_gen: v6e
topology: v6e:2x2x1
jax: 0.10.0
libtpu: 0.0.40
codegen_flags: <defaults>
</compile_context>

<pallas_src>
import functools

import jax
import jax.numpy as jnp
from jax import lax
from jax.experimental import pallas as pl
from jax.experimental.pallas import tpu as pltpu


def _round_up(x, m):
    return (x + m - 1) // m * m


def _make_mlp_kernel(bt, compute_dtype):
    """Per-grid-step kernel: bt images, each a (C, thw) pixel slab."""

    def mlp_one(xb, w1, b1, w2, b2, out_dtype):
        # xb: (C, thw); w1: (Hd, C); b1: (Hd, 1); w2: (Od, Hd); b2: (Od, 1)
        if xb.dtype != compute_dtype:
            xb = xb.astype(compute_dtype)
        h = jnp.dot(w1, xb, preferred_element_type=jnp.float32)
        h = jnp.maximum(h + b1, 0.0)                     # f32 bias + ReLU
        hc = h if h.dtype == compute_dtype else h.astype(compute_dtype)
        y = jnp.dot(w2, hc, preferred_element_type=jnp.float32)
        y = jnp.maximum(y + b2, 0.0)
        return y.astype(out_dtype)

    def kernel(x_ref, w1_ref, b1_ref, w2_ref, b2_ref, o_ref):
        # x_ref: (bt, C, thw)   pixels on the lane axis
        # o_ref: (bt, Od, thw)  lane-dense output
        w1 = w1_ref[...]
        b1 = b1_ref[...]
        w2 = w2_ref[...]
        b2 = b2_ref[...]
        if bt == 1:
            o_ref[0] = mlp_one(x_ref[0], w1, b1, w2, b2, o_ref.dtype)
        else:
            def body(b, carry):
                o_ref[b] = mlp_one(x_ref[b], w1, b1, w2, b2, o_ref.dtype)
                return carry
            lax.fori_loop(0, bt, body, 0)

    return kernel


def _derive_tiles(B, C, HW, hidden_dim, out_dim, in_bytes, out_bytes, cbytes,
                  cast_x, vmem_budget_bytes, max_pixels_per_step,
                  min_grid_steps):
    """Pick (bt, thw) from a VMEM budget; keep the grid >= min_grid_steps."""
    bytes_per_pixel = (2 * C * in_bytes            # x, double-buffered
                       + 2 * out_dim * out_bytes   # y, double-buffered
                       + hidden_dim * 4            # h (f32)
                       + hidden_dim * cbytes       # h cast for 2nd matmul
                       + out_dim * 4               # y (f32) before final cast
                       + (C * cbytes if cast_x else 0))
    max_pixels = max(128, vmem_budget_bytes // bytes_per_pixel)
    max_pixels = min(max_pixels, max_pixels_per_step)

    if HW <= max_pixels:
        thw = HW                                    # whole map in one block
        bt = max(1, min(B, max_pixels // max(HW, 1)))
    else:
        thw = max(128, (max_pixels // 128) * 128)   # lane-aligned tile
        bt = 1

    def steps(bt_, thw_):
        return pl.cdiv(B, bt_) * pl.cdiv(HW, thw_)

    # v7x megacore: keep enough grid steps for both TensorCores.
    while bt > 1 and steps(bt, thw) < min_grid_steps:
        bt = max(1, bt // 2)
    while thw > 128 and steps(bt, thw) < min_grid_steps:
        thw = max(128, _round_up(thw // 2, 128))

    return bt, thw, bytes_per_pixel


@functools.partial(jax.jit, static_argnames=("compute_dtype", "out_dtype",
                                             "vmem_budget_bytes",
                                             "max_pixels_per_step",
                                             "min_grid_steps"))
def pixel_level_feature_projector(x, w1, b1, w2, b2, *,
                                  compute_dtype=None,
                                  out_dtype=None,
                                  vmem_budget_bytes=16 * 1024 * 1024,
                                  max_pixels_per_step=8192,
                                  min_grid_steps=4):
    """Per-pixel 2-layer MLP projector (PixelLevelFeatureProjector forward).

    x : (B, C, H, W) NCHW (f32 or bf16 — pass bf16 to halve the HBM stream)
    w1: (hidden_dim, C)      PyTorch Linear layout (out_features, in_features)
    b1: (hidden_dim,)
    w2: (out_dim, hidden_dim)
    b2: (out_dim,)
    compute_dtype: matmul input dtype (default: x.dtype)
    out_dtype:     output dtype       (default: x.dtype)
    Returns (B, out_dim, H, W).
    """
    B, C, H, W = x.shape
    hidden_dim = w1.shape[0]
    out_dim = w2.shape[0]
    HW = H * W

    cd = (jax.dtypes.canonicalize_dtype(compute_dtype)
          if compute_dtype is not None else x.dtype)
    od = (jax.dtypes.canonicalize_dtype(out_dtype)
          if out_dtype is not None else x.dtype)

    cast_x = (x.dtype != cd)
    bt, thw, bpp = _derive_tiles(
        B, C, HW, hidden_dim, out_dim,
        in_bytes=x.dtype.itemsize, out_bytes=od.itemsize, cbytes=cd.itemsize,
        cast_x=cast_x, vmem_budget_bytes=vmem_budget_bytes,
        max_pixels_per_step=max_pixels_per_step, min_grid_steps=min_grid_steps)

    # NCHW is already (B, C, H*W): free reshape, no transpose, no padding.
    x3 = x.reshape(B, C, HW)

    # Pre-cast the (tiny) weights; keep biases in f32 for the epilogue.
    w1c = w1.astype(cd)
    w2c = w2.astype(cd)
    b1c = b1.astype(jnp.float32).reshape(hidden_dim, 1)
    b2c = b2.astype(jnp.float32).reshape(out_dim, 1)

    grid = (pl.cdiv(B, bt), pl.cdiv(HW, thw))

    # VMEM accounting -> explicit limit with headroom, capped for v7x (64 MiB).
    est = (bt * thw * bpp
           + 2 * hidden_dim * C * cd.itemsize
           + 2 * out_dim * hidden_dim * cd.itemsize
           + 2 * (hidden_dim + out_dim) * 128 * 4)
    vmem_limit = int(min(48 * 1024 * 1024,
                         max(32 * 1024 * 1024, est + est // 2 + (2 << 20))))

    y3 = pl.pallas_call(
        _make_mlp_kernel(bt, cd),
        out_shape=jax.ShapeDtypeStruct((B, out_dim, HW), od),
        grid_spec=pltpu.PrefetchScalarGridSpec(
            num_scalar_prefetch=0,
            grid=grid,
            in_specs=[
                pl.BlockSpec((bt, C, thw), lambda bi, ji: (bi, 0, ji)),
                pl.BlockSpec((hidden_dim, C), lambda bi, ji: (0, 0)),
                pl.BlockSpec((hidden_dim, 1), lambda bi, ji: (0, 0)),
                pl.BlockSpec((out_dim, hidden_dim), lambda bi, ji: (0, 0)),
                pl.BlockSpec((out_dim, 1), lambda bi, ji: (0, 0)),
            ],
            out_specs=pl.BlockSpec((bt, out_dim, thw),
                                   lambda bi, ji: (bi, 0, ji)),
        ),
        compiler_params=pltpu.CompilerParams(
            dimension_semantics=("parallel", "parallel"),
            vmem_limit_bytes=vmem_limit),
    )(x3, w1c, b1c, w2c, b2c)

    return y3.reshape(B, out_dim, H, W)


def xavier_uniform(key, fan_out, fan_in, dtype=jnp.float32):
    # torch.nn.init.xavier_uniform_ for Linear weight (out_features, in_features).
    bound = (6.0 / (fan_in + fan_out)) ** 0.5
    return jax.random.uniform(key, (fan_out, fan_in), dtype=dtype,
                              minval=-bound, maxval=bound)


def _reference(x, w1, b1, w2, b2):
    B, C, H, W = x.shape
    out_dim = w2.shape[0]
    x_rows = jnp.transpose(x, (0, 2, 3, 1)).reshape(-1, C).astype(jnp.float32)
    h = jnp.maximum(x_rows @ w1.T + b1, 0.0)
    y = jnp.maximum(h @ w2.T + b2, 0.0)
    return jnp.transpose(y.reshape(B, H, W, out_dim), (0, 3, 1, 2))


if __name__ == "__main__":
    # Small shapes consistent with the module (per-pixel MLP on an NCHW map).
    B, C, H, W = 2, 128, 16, 16           # in_dim = C = 128
    hidden_dim, out_dim = 64, 32

    key = jax.random.PRNGKey(0)
    kx, kw1, kw2, kx2, kx3 = jax.random.split(key, 5)

    x = jax.random.normal(kx, (B, C, H, W), dtype=jnp.float32)

    # Xavier-uniform weights (torch layout), zero biases — mirrors
    # initialize_weights() in the PyTorch module.
    w1 = xavier_uniform(kw1, hidden_dim, C)            # (hidden_dim, in_dim)
    b1 = jnp.zeros((hidden_dim,), jnp.float32)
    w2 = xavier_uniform(kw2, out_dim, hidden_dim)      # (out_dim, hidden_dim)
    b2 = jnp.zeros((out_dim,), jnp.float32)

    # f32 path — exact vs. reference.
    y = pixel_level_feature_projector(x, w1, b1, w2, b2)
    jax.block_until_ready(y)
    y_ref = _reference(x, w1, b1, w2, b2)
    assert y.shape == (B, out_dim, H, W)
    assert jnp.allclose(y, y_ref, atol=1e-5, rtol=1e-5)

    # bf16 input stream (producer emits bf16 NCHW) — MXU-friendly, looser tol.
    # NOTE: x, weights and the intermediate h are bf16, so error compounds
    # across the two matmuls; 5e-2 tolerance vs. the f32 reference.
    x_bf16 = x.astype(jnp.bfloat16)
    y_bf16 = pixel_level_feature_projector(
        x_bf16, w1, b1, w2, b2,
        compute_dtype=jnp.bfloat16, out_dtype=jnp.float32)
    jax.block_until_ready(y_bf16)
    assert jnp.allclose(y_bf16, y_ref, atol=5e-2, rtol=5e-2)

    # Ragged spatial size (HW not a multiple of the tile) exercises the
    # masked partial final block on the lane axis (no pad/slice round trips).
    H2, W2 = 10, 15
    x2 = jax.random.normal(kx2, (B, C, H2, W2), dtype=jnp.float32)
    y2 = pixel_level_feature_projector(x2, w1, b1, w2, b2)
    jax.block_until_ready(y2)
    y2_ref = _reference(x2, w1, b1, w2, b2)
    assert y2.shape == (B, out_dim, H2, W2)
    assert jnp.allclose(y2, y2_ref, atol=1e-5, rtol=1e-5)

    # Batched-per-step path (bt > 1) with a ragged batch block: B=3, bt=2
    # (small VMEM budget forces bt=2; min_grid_steps=1 keeps the big tile).
    B3 = 3
    x3_in = jax.random.normal(kx3, (B3, C, H, W), dtype=jnp.float32)
    y3 = pixel_level_feature_projector(
        x3_in, w1, b1, w2, b2,
        vmem_budget_bytes=1_000_000, min_grid_steps=1)
    jax.block_until_ready(y3)
    y3_ref = _reference(x3_in, w1, b1, w2, b2)
    assert y3.shape == (B3, out_dim, H, W)
    assert jnp.allclose(y3, y3_ref, atol=1e-5, rtol=1e-5)

    print("KERNEL_OK")
</pallas_src>

<mosaic_0001>
module attributes {stable_mosaic.version = 11 : i64} {
  func.func @kernel(%arg0: i32, %arg1: i32, %arg2: memref<1x128x128xf32, #tpu.memory_space<vmem>>, %arg3: memref<64x128xf32, #tpu.memory_space<vmem>>, %arg4: memref<64x1xf32, #tpu.memory_space<vmem>>, %arg5: memref<32x64xf32, #tpu.memory_space<vmem>>, %arg6: memref<32x1xf32, #tpu.memory_space<vmem>>, %arg7: memref<1x32x128xf32, #tpu.memory_space<vmem>>) attributes {dimension_semantics = [#tpu.dimension_semantics<parallel>, #tpu.dimension_semantics<parallel>], iteration_bounds = array<i64: 2, 2>, scalar_prefetch = 0 : i64, scratch_operands = 0 : i64, tpu.core_type = #tpu.core_type<tc>, window_params = [{transform_indices = @transform_0, window_bounds = array<i64: 1, 128, 128>}, {pipeline_mode = #tpu.pipeline_mode<synchronous>, transform_indices = @transform_1, window_bounds = array<i64: 64, 128>}, {pipeline_mode = #tpu.pipeline_mode<synchronous>, transform_indices = @transform_2, window_bounds = array<i64: 64, 1>}, {pipeline_mode = #tpu.pipeline_mode<synchronous>, transform_indices = @transform_3, window_bounds = array<i64: 32, 64>}, {pipeline_mode = #tpu.pipeline_mode<synchronous>, transform_indices = @transform_4, window_bounds = array<i64: 32, 1>}, {transform_indices = @transform_5, window_bounds = array<i64: 1, 32, 128>}]} {
    %c0 = arith.constant 0 : index
    %c0_0 = arith.constant 0 : index
    %0 = vector.load %arg3[%c0, %c0_0] : memref<64x128xf32, #tpu.memory_space<vmem>>, vector<64x128xf32>
    %c0_1 = arith.constant 0 : index
    %c0_2 = arith.constant 0 : index
    %1 = vector.load %arg4[%c0_1, %c0_2] : memref<64x1xf32, #tpu.memory_space<vmem>>, vector<64x1xf32>
    %c0_3 = arith.constant 0 : index
    %c0_4 = arith.constant 0 : index
    %2 = vector.load %arg5[%c0_3, %c0_4] : memref<32x64xf32, #tpu.memory_space<vmem>>, vector<32x64xf32>
    %c0_5 = arith.constant 0 : index
    %c0_6 = arith.constant 0 : index
    %3 = vector.load %arg6[%c0_5, %c0_6] : memref<32x1xf32, #tpu.memory_space<vmem>>, vector<32x1xf32>
    %c0_7 = arith.constant 0 : index
    %c0_8 = arith.constant 0 : index
    %c0_9 = arith.constant 0 : index
    %4 = vector.load %arg2[%c0_7, %c0_8, %c0_9] : memref<1x128x128xf32, #tpu.memory_space<vmem>>, vector<1x128x128xf32>
    %5 = vector.shape_cast %4 : vector<1x128x128xf32> to vector<128x128xf32>
    %cst = arith.constant dense<0.000000e+00> : vector<64x128xf32>
    %6 = tpu.matmul %0, %5, %cst {dimension_numbers = #tpu.dot_dimension_numbers<[1], [0], [0], [1], [0, 0, 1, 1], [], []>} : vector<64x128xf32>, vector<128x128xf32>, vector<64x128xf32> -> vector<64x128xf32>
    %7 = vector.broadcast %1 : vector<64x1xf32> to vector<64x128xf32>
    %8 = arith.addf %6, %7 : vector<64x128xf32>
    %cst_10 = arith.constant 0.000000e+00 : f32
    %9 = vector.broadcast %cst_10 : f32 to vector<64x128xf32>
    %10 = arith.maximumf %8, %9 : vector<64x128xf32>
    %cst_11 = arith.constant dense<0.000000e+00> : vector<32x128xf32>
    %11 = tpu.matmul %2, %10, %cst_11 {dimension_numbers = #tpu.dot_dimension_numbers<[1], [0], [0], [1], [0, 0, 1, 1], [], []>} : vector<32x64xf32>, vector<64x128xf32>, vector<32x128xf32> -> vector<32x128xf32>
    %12 = vector.broadcast %3 : vector<32x1xf32> to vector<32x128xf32>
    %13 = arith.addf %11, %12 : vector<32x128xf32>
    %cst_12 = arith.constant 0.000000e+00 : f32
    %14 = vector.broadcast %cst_12 : f32 to vector<32x128xf32>
    %15 = arith.maximumf %13, %14 : vector<32x128xf32>
    %c0_13 = arith.constant 0 : index
    %c0_14 = arith.constant 0 : index
    %c0_15 = arith.constant 0 : index
    %16 = vector.load %arg7[%c0_13, %c0_14, %c0_15] : memref<1x32x128xf32, #tpu.memory_space<vmem>>, vector<1x32x128xf32>
    %17 = vector.shape_cast %16 : vector<1x32x128xf32> to vector<32x128xf32>
    %18 = vector.shape_cast %15 : vector<32x128xf32> to vector<1x32x128xf32>
    tpu.vector_store %arg7[%c0_13, %c0_14, %c0_15], %18 {strides = array<i32>} : memref<1x32x128xf32, #tpu.memory_space<vmem>>, vector<1x32x128xf32>,
    return
  }
  func.func @transform_0(%arg0: i32, %arg1: i32) -> (i32, i32, i32) {
    %c0_i32 = arith.constant 0 : i32
    %c0_i32_0 = arith.constant 0 : i32
    return %arg0, %c0_i32, %arg1 : i32, i32, i32
  }
  func.func @transform_1(%arg0: i32, %arg1: i32) -> (i32, i32) {
    %c0_i32 = arith.constant 0 : i32
    %c0_i32_0 = arith.constant 0 : i32
    %c0_i32_1 = arith.constant 0 : i32
    return %c0_i32, %c0_i32_0 : i32, i32
  }
  func.func @transform_2(%arg0: i32, %arg1: i32) -> (i32, i32) {
    %c0_i32 = arith.constant 0 : i32
    %c0_i32_0 = arith.constant 0 : i32
    %c0_i32_1 = arith.constant 0 : i32
    return %c0_i32, %c0_i32_0 : i32, i32
  }
  func.func @transform_3(%arg0: i32, %arg1: i32) -> (i32, i32) {
    %c0_i32 = arith.constant 0 : i32
    %c0_i32_0 = arith.constant 0 : i32
    %c0_i32_1 = arith.constant 0 : i32
    return %c0_i32, %c0_i32_0 : i32, i32
  }
  func.func @transform_4(%arg0: i32, %arg1: i32) -> (i32, i32) {
    %c0_i32 = arith.constant 0 : i32
    %c0_i32_0 = arith.constant 0 : i32
    %c0_i32_1 = arith.constant 0 : i32
    return %c0_i32, %c0_i32_0 : i32, i32
  }
  func.func @transform_5(%arg0: i32, %arg1: i32) -> (i32, i32, i32) {
    %c0_i32 = arith.constant 0 : i32
    %c0_i32_0 = arith.constant 0 : i32
    return %arg0, %c0_i32, %arg1 : i32, i32, i32
  }
}

</mosaic_0001>

<bundles_post_ra>
// kernel: pixel_level_feature_projector.1
= control target key start
LH: loop header
LB: loop body
LE: loop exit
PB: predicated region body
PF: predicated region fallthrough
CT: control target
= control target key end

     0   :  { %s1046_s18 = smov 0   ;;  %s1048_s19 = smov 0   ;;  %s1258_s0 = inlined_call_operand.vmem [shape: f32[2,128,256], index: 0, kind: input, shape index: {}]   ;;  %s1259_s1 = inlined_call_operand.vmem [shape: f32[64,128], index: 1, kind: input, shape index: {}]   ;;  %s1260_s2 = inlined_call_operand.vmem [shape: f32[64,1], index: 2, kind: input, shape index: {}]   ;;  %s1261_s3 = inlined_call_operand.vmem [shape: f32[32,64], index: 3, kind: input, shape index: {}]   ;;  %s1262_s4 = inlined_call_operand.vmem [shape: f32[32,1], index: 4, kind: input, shape index: {}]   ;;  %s1263_s5 = inlined_call_operand.vmem [shape: f32[2,32,256], index: 5, kind: output, shape index: {}]  }
   0x1   :  { %s1050_s20 = smov 0   ;;  %s1052_s21 = smov 0  }
   0x2   :  { %s1054_s22 = smov 0   ;;  %s1056_s23 = smov 0  }
   0x3   :  { %s1058_s24 = smov 0  }
   0x4 LB: > { %s24_s25 = sadd.s32 1, %s1005_s22  ;;  %s27_s26 = sadd.s32 1, %s1009_s23  ;;  %s1013_s24 = sphi %s1058_s24, %s15_s24   ;;  %s1009_s23 = sphi %s1056_s23, %s1270_s23   ;;  %s1005_s22 = sphi %s1054_s22, %s1269_s22   ;;  %s1001_s21 = sphi %s1052_s21, %s1268_s21   ;;  %s997_s20 = sphi %s1050_s20, %s1267_s20   ;;  %s993_s19 = sphi %s1048_s19, %s1266_s19   ;;  %s989_s18 = sphi %s1046_s18, %s1265_s18  }
   0x5   : > { %p25_p0 = scmp.ge.s32.totalorder %s24_s25, 2  ;;  %s779_s27 = sadd.s32 4294967295, %s1013_s24  }
   0x6   : > { %p43_p1 = scmp.ne.s32.totalorder %s993_s19, %s989_s18  ;;  %p44_p2 = scmp.eq.s32.totalorder %s1013_s24, 0 }
   0x7   : > { %s1272_s25 = smov (%p25_p0, %s24_s25), 0  ;;  %s1274_s26 = smov (!%p25_p0, %s27_s26), %s1009_s23 }
   0x8   : > { %p29_p3 = scmp.ge.s32.totalorder %s1274_s26, 2  ;;  %p159_p4 = scmp.eq.s32.totalorder %s779_s27, 3 }
   0x9   : > { %s32_s28 = ssub.s32 %s1005_s22, %s1272_s25  ;;  %p45_p5 = por %p44_p2, %p43_p1 }
   0xa   : > { %s1276_s26 = smov (%p29_p3, %s1274_s26), 0  ;;  %p1094_p6 = por %p159_p4, %p43_p1 }
   0xb   : > { %s31_s30 = ssub.s32 %s1009_s23, %s1276_s26  ;;  %s36_s7 = sadd.s32 1, %s993_s19 }
   0xc   : > { %s33_s6 = sor.u32 %s32_s28, %s31_s30  ;;  %p782_p8 = scmp.ge.s32.totalorder %s1013_s24, 4 }
   0xd   : > { %p34_p7 = scmp.eq.s32.totalorder %s33_s6, 0 }
   0xe   : > { %193 = sbr.rel (%p782_p8) target bundleno = 33 (0x21), region = 32 }
   0xf   : > { %s1102_s8 = scalar_select %p34_p7, %s993_s19, %s36_s7  }
  0x13   : > { %196 = sbr.rel (!%p45_p5) target bundleno = 33 (0x21), region = 36  ;;  %s198_s9 = sand.u32 (%p45_p5), 1, %s993_s19  }
  0x14   : > { %s784_s10 = sshll.u32 (%p45_p5), %s1009_s23, 5  ;;  %s783_s11 = sshll.u32 (%p45_p5), %s198_s9, 7 }
  0x15   : > { %s202_s12 = sadd.s32 (%p45_p5), %s1005_s22, %s784_s10  ;;  %s200_s17 = scalar_lea.vmem (%p45_p5), [#allocation2], %s783_s11 }
  0x16   : > { %s785_s13 = sshll.u32 (%p45_p5), %s202_s12, 3 }
  0x17   : > { %s1111_s16 = scalar_lea.vmem (%p45_p5), %s1258_s0, %s785_s13 }
  0x18   : > { %v263_v0 = vld [vmem:[%s1111_s16] sm:$0xff]  ;;  %v265_v1 = vld [vmem:[%s1111_s16 + $0x10] sm:$0xff] }
  0x19   : > { %v267_v2 = vld [vmem:[%s1111_s16 + $0x20] sm:$0xff]  ;;  %264 = vst [vmem:[%s200_s17] sm:$0xff] %v263_v0  ;;  %266 = vst [vmem:[%s200_s17 + $0x8] sm:$0xff] %v265_v1  ;;  %v269_v3 = vld [vmem:[%s1111_s16 + $0x30] sm:$0xff] }
  0x1a   : > { %268 = vst [vmem:[%s200_s17 + $0x10] sm:$0xff] %v267_v2  ;;  %v271_v4 = vld [vmem:[%s1111_s16 + $0x40] sm:$0xff]  ;;  %v273_v5 = vld [vmem:[%s1111_s16 + $0x50] sm:$0xff]  ;;  %270 = vst [vmem:[%s200_s17 + $0x18] sm:$0xff] %v269_v3 }
  0x1b   : > { %272 = vst [vmem:[%s200_s17 + $0x20] sm:$0xff] %v271_v4  ;;  %274 = vst [vmem:[%s200_s17 + $0x28] sm:$0xff] %v273_v5  ;;  %v275_v6 = vld [vmem:[%s1111_s16 + $0x60] sm:$0xff]  ;;  %v277_v7 = vld [vmem:[%s1111_s16 + $0x70] sm:$0xff] }
  0x1c   : > { %v279_v8 = vld [vmem:[%s1111_s16 + $0x80] sm:$0xff]  ;;  %276 = vst [vmem:[%s200_s17 + $0x30] sm:$0xff] %v275_v6  ;;  %278 = vst [vmem:[%s200_s17 + $0x38] sm:$0xff] %v277_v7  ;;  %v281_v9 = vld [vmem:[%s1111_s16 + $0x90] sm:$0xff] }
  0x1d   : > { %280 = vst [vmem:[%s200_s17 + $0x40] sm:$0xff] %v279_v8  ;;  %v283_v10 = vld [vmem:[%s1111_s16 + $0xa0] sm:$0xff]  ;;  %v285_v11 = vld [vmem:[%s1111_s16 + $0xb0] sm:$0xff]  ;;  %282 = vst [vmem:[%s200_s17 + $0x48] sm:$0xff] %v281_v9 }
  0x1e   : > { %284 = vst [vmem:[%s200_s17 + $0x50] sm:$0xff] %v283_v10  ;;  %286 = vst [vmem:[%s200_s17 + $0x58] sm:$0xff] %v285_v11  ;;  %v287_v12 = vld [vmem:[%s1111_s16 + $0xc0] sm:$0xff]  ;;  %v289_v13 = vld [vmem:[%s1111_s16 + $0xd0] sm:$0xff] }
  0x1f   : > { %v291_v14 = vld [vmem:[%s1111_s16 + $0xe0] sm:$0xff]  ;;  %288 = vst [vmem:[%s200_s17 + $0x60] sm:$0xff] %v287_v12  ;;  %290 = vst [vmem:[%s200_s17 + $0x68] sm:$0xff] %v289_v13  ;;  %v293_v15 = vld [vmem:[%s1111_s16 + $0xf0] sm:$0xff] }
  0x20   : > { %292 = vst [vmem:[%s200_s17 + $0x70] sm:$0xff] %v291_v14  ;;  %294 = vst [vmem:[%s200_s17 + $0x78] sm:$0xff] %v293_v15 }
  0x21 PF: > { %p786_p9 = scmp.ge.s32.totalorder %s1013_s24, 1  ;;  %p299_p10 = scmp.lt.s32.totalorder %s1013_s24, 5 }
  0x23   : > { %p300_p11 = pnand %p786_p9, %p299_p10 }
  0x24   : > { %s306_s27 = sand.u32 (!%p300_p11), 1, %s989_s18  }
  0x25   : > { %303 = sbr.rel (%p300_p11) target bundleno = 514 (0x202), region = 74  ;;  %s787_s6 = sshll.u32 (!%p300_p11), %s306_s27, 7 }
  0x26   : > { %s1140_s10 = scalar_lea.vmem (!%p300_p11), [#allocation2], %s787_s6  ;;  %s788_s17 = sshll.u32 (!%p300_p11), %s306_s27, 5 }
  0x27   : > { %s331_s28 = scalar_lea.vmem (!%p300_p11), [#allocation3], %s788_s17 }
  0x2a   : > { %v332_v16 = vld [vmem:[%s1259_s1] sm:$0xff]  ;;  %v1015_v17 = vmov 0   ;;  %v347_v18 = vld [vmem:[%s1260_s2 + $0x38] sm:$0xff]  ;;  %v370_v20 = vld [vmem:[%s1140_s10 + $0x70] sm:$0xff]  ;;  %vm545_vm0 = vcmask 523264   ;;  %s794_s18 = sshll.u32 (%p1094_p6), %s1001_s21, 3 }
  0x2b   : > { %866 = vmatprep.mubr.f32.mxu0 %v332_v16  ;;  %957 = vset.pattern.permute.xlu0 %v1015_v17  ;;  %v371_v19 = vld [vmem:[%s1140_s10 + $0x78] sm:$0xff]  ;;  %v369_v21 = vld [vmem:[%s1140_s10 + $0x68] sm:$0xff]  ;;  %v368_v22 = vld [vmem:[%s1140_s10 + $0x60] sm:$0xff]  ;;  %s659_s27 = sadd.s32 (%p1094_p6), %s997_s20, %s794_s18 }
  0x2c   : > { %958 = vset.pattern.permute.xlu1 %v1015_v17  ;;  %409 = vperm.xlu0 %957, %v347_v18   ;;  %v345_v23 = vld [vmem:[%s1260_s2 + $0x28] sm:$0xff]  ;;  %v346_v24 = vld [vmem:[%s1260_s2 + $0x30] sm:$0xff]  ;;  %v367_v25 = vld [vmem:[%s1140_s10 + $0x58] sm:$0xff]  ;;  %s795_s30 = sshll.u32 (%p1094_p6), %s659_s27, 3 }
  0x2d   : > { %834 = vmatprep.subr.mxu0 %v371_v19  ;;  %399 = vperm.xlu1 %958, %v345_v23   ;;  %v344_v26 = vld [vmem:[%s1260_s2 + $0x20] sm:$0xff]  ;;  %v366_v27 = vld [vmem:[%s1140_s10 + $0x50] sm:$0xff]  ;;  %v343_v28 = vld [vmem:[%s1260_s2 + $0x18] sm:$0xff]  ;;  %s661_s9 = scalar_lea.vmem (%p1094_p6), %s1263_s5, %s795_s30 }
  0x2e   : > { %835 = vmatpush3.msra.mxu0 %v371_v19  ;;  %v365_v29 = vld [vmem:[%s1140_s10 + $0x48] sm:$0xff]  ;;  %v342_v30 = vld [vmem:[%s1260_s2 + $0x10] sm:$0xff]  ;;  %v364_v31 = vld [vmem:[%s1140_s10 + $0x40] sm:$0xff] }
  0x2f   : > { %836 = vmatprep.subr.mxu0 %v370_v20  ;;  %v341_v32 = vld [vmem:[%s1260_s2 + $0x8] sm:$0xff]  ;;  %v363_v33 = vld [vmem:[%s1140_s10 + $0x38] sm:$0xff]  ;;  %v340_v34 = vld [vmem:[%s1260_s2] sm:$0xff] }
  0x30   : > { %837 = vmatpush3.msra.mxu0 %v370_v20  ;;  %404 = vperm.xlu0 %957, %v346_v24   ;;  %v362_v35 = vld [vmem:[%s1140_s10 + $0x30] sm:$0xff]  ;;  %v352_v36 = vld [vmem:[%s1262_s4] sm:$0xff]  ;;  %v361_v37 = vld [vmem:[%s1140_s10 + $0x28] sm:$0xff] }
  0x31   : > { %838 = vmatprep.subr.mxu0 %v369_v21  ;;  %394 = vperm.xlu1 %958, %v344_v26   ;;  %v353_v38 = vld [vmem:[%s1262_s4 + $0x8] sm:$0xff]  ;;  %v360_v39 = vld [vmem:[%s1140_s10 + $0x20] sm:$0xff]  ;;  %v354_v40 = vld [vmem:[%s1262_s4 + $0x10] sm:$0xff] }
  0x32   : > { %839 = vmatpush3.msra.mxu0 %v369_v21  ;;  %v359_v41 = vld [vmem:[%s1140_s10 + $0x18] sm:$0xff]  ;;  %v358_v43 = vld [vmem:[%s1140_s10 + $0x10] sm:$0xff]  ;;  %v357_v44 = vld [vmem:[%s1140_s10 + $0x8] sm:$0xff] }
  0x33   : > { %840 = vmatprep.subr.mxu0 %v368_v22  ;;  %v355_v42 = vld [vmem:[%s1262_s4 + $0x18] sm:$0xff]  ;;  %v356_v45 = vld [vmem:[%s1140_s10] sm:$0xff]  ;;  %v333_v46 = vld [vmem:[%s1259_s1 + $0x8] sm:$0xff] }
  0x34   : > { %841 = vmatpush3.msra.mxu0 %v368_v22  ;;  %389 = vperm.xlu0 %957, %v343_v28   ;;  %v334_v47 = vld [vmem:[%s1259_s1 + $0x10] sm:$0xff]  ;;  %v335_v48 = vld [vmem:[%s1259_s1 + $0x18] sm:$0xff]  ;;  %v336_v49 = vld [vmem:[%s1259_s1 + $0x20] sm:$0xff] }
  0x35   : > { %842 = vmatprep.subr.mxu0 %v367_v25  ;;  %384 = vperm.xlu1 %958, %v342_v30   ;;  %v337_v50 = vld [vmem:[%s1259_s1 + $0x28] sm:$0xff]  ;;  %v338_v51 = vld [vmem:[%s1259_s1 + $0x30] sm:$0xff]  ;;  %v339_v52 = vld [vmem:[%s1259_s1 + $0x38] sm:$0xff] }
  0x36   : > { %843 = vmatpush3.msra.mxu0 %v367_v25  ;;  %v348_v53 = vld [vmem:[%s1261_s3] sm:$0xff]  ;;  %v349_v22 = vld [vmem:[%s1261_s3 + $0x8] sm:$0xff]  ;;  %v350_v23 = vld [vmem:[%s1261_s3 + $0x10] sm:$0xff] }
  0x37   : > { %844 = vmatprep.subr.mxu0 %v366_v27  ;;  %894 = vmatprep.mubr.msk.f32.mxu1 %vm545_vm0, %v348_v53  ;;  %v351_v24 = vld [vmem:[%s1261_s3 + $0x18] sm:$0xff] }
  0x38   : > { %845 = vmatpush3.msra.mxu0 %v366_v27  ;;  %379 = vperm.xlu0 %957, %v341_v32  }
  0x39   : > { %846 = vmatprep.subr.mxu0 %v365_v29  ;;  %374 = vperm.xlu1 %958, %v340_v34  }
  0x3a   : > { %847 = vmatpush3.msra.mxu0 %v365_v29 }
  0x3b   : > { %848 = vmatprep.subr.mxu0 %v364_v31 }
  0x3c   : > { %849 = vmatpush3.msra.mxu0 %v364_v31  ;;  %527 = vperm.xlu0 %957, %v352_v36  }
  0x3d   : > { %850 = vmatprep.subr.mxu0 %v363_v33  ;;  %532 = vperm.xlu1 %958, %v353_v38  }
  0x3e   : > { %851 = vmatpush3.msra.mxu0 %v363_v33 }
  0x3f   : > { %852 = vmatprep.subr.mxu0 %v362_v35 }
  0x40   : > { %853 = vmatpush3.msra.mxu0 %v362_v35  ;;  %537 = vperm.xlu0 %957, %v354_v40  }
  0x41   : > { %854 = vmatprep.subr.mxu0 %v361_v37  ;;  %542 = vperm.xlu1 %958, %v355_v42  }
  0x42   : > { %855 = vmatpush3.msra.mxu0 %v361_v37 }
  0x43   : > { %856 = vmatprep.subr.mxu0 %v360_v39 }
  0x44   : > { %857 = vmatpush3.msra.mxu0 %v360_v39 }
  0x45   : > { %858 = vmatprep.subr.mxu0 %v359_v41 }
  0x46   : > { %859 = vmatpush3.msra.mxu0 %v359_v41 }
  0x47   : > { %860 = vmatprep.subr.mxu0 %v358_v43 }
  0x48   : > { %861 = vmatpush3.msra.mxu0 %v358_v43 }
  0x49   : > { %862 = vmatprep.subr.mxu0 %v357_v44 }
  0x4a   : > { %863 = vmatpush3.msra.mxu0 %v357_v44 }
  0x4b   : > { %864 = vmatprep.subr.mxu0 %v356_v45 }
  0x4c   : > { %865 = vmatpush3.msra.mxu0 %v356_v45 }
  0x4d   : > { %867 = vmatmul.mubr.f32.vlgmr.msra.gmra.mxu0 %v333_v46 }
  0x4e   : > { %869 = vmatprep.mubr.f32.mxu0 %v334_v47 }
  0x51   : > { %870 = vmatmul.mubr.f32.gmra.mxu0 %v335_v48 }
  0x52   : > { %872 = vmatprep.mubr.f32.mxu0 %v336_v49 }
  0x55   : > { %873 = vmatmul.mubr.f32.gmra.mxu0 %v337_v50 }
  0x56   : > { %875 = vmatprep.mubr.f32.mxu0 %v338_v51 }
  0x59   : > { %876 = vmatmul.mubr.f32.gmra.mxu0 %v339_v52 }
  0xa7   : > { %v410_v55 = vpop.permute.xlu0 %409 }
  0xa8   : > { %v400_v57 = vpop.permute.xlu1 %399 }
  0xab   : > { %v405_v60 = vpop.permute.xlu0 %404 }
  0xac   : > { %v395_v62 = vpop.permute.xlu1 %394 }
  0xaf   : > { %v390_v2 = vpop.permute.xlu0 %389 }
  0xb0   : > { %v385_v7 = vpop.permute.xlu1 %384 }
  0xb3   : > { %v380_v12 = vpop.permute.xlu0 %379 }
  0xb4   : > { %v375_v15 = vpop.permute.xlu1 %374 }
  0xb7   : > { %v528_v26 = vpop.permute.xlu0 %527 }
  0xb8   : > { %v533_v25 = vpop.permute.xlu1 %532 }
  0xbb   : > { %v538_v36 = vpop.permute.xlu0 %537 }
  0xbc   : > { %v543_v32 = vpop.permute.xlu1 %542 }
 0x10d   : > { %v868_v54 = vpop.f32.mrf.mxu0 }
 0x10e   : > { %v484_v16 = vadd.f32 %v868_v54, %v380_v12 }
 0x10f   : > { %v478_v56 = vpop.f32.mrf.mxu0 }
 0x110   : > { %v479_v18 = vadd.f32 %v478_v56, %v375_v15  ;;  %v518_v20 = vmax.f32 %v484_v16, 0.0 }
 0x111   : > { %v871_v58 = vpop.f32.mrf.mxu0 }
 0x112   : > { %v494_v10 = vadd.f32 %v871_v58, %v390_v2  ;;  %v517_v21 = vmax.f32 %v479_v18, 0.0 }
 0x113   : > { %v488_v59 = vpop.f32.mrf.mxu0 }
 0x114   : > { %v489_v13 = vadd.f32 %v488_v59, %v385_v7  ;;  %v520_v17 = vmax.f32 %v494_v10, 0.0 }
 0x115   : > { %v874_v61 = vpop.f32.mrf.mxu0 }
 0x116   : > { %v504_v4 = vadd.f32 %v874_v61, %v400_v57  ;;  %v519_v19 = vmax.f32 %v489_v13, 0.0 }
 0x117   : > { %v498_v63 = vpop.f32.mrf.mxu0 }
 0x118   : > { %v499_v8 = vadd.f32 %v498_v63, %v395_v62  ;;  %v522_v11 = vmax.f32 %v504_v4, 0.0 }
 0x119   : > { %v877_v0 = vpop.f32.mrf.mxu0 }
 0x11a   : > { %v514_v1 = vadd.f32 %v877_v0, %v410_v55  ;;  %v521_v14 = vmax.f32 %v499_v8, 0.0 }
 0x11b   : > { %v508_v3 = vpop.f32.mrf.mxu0 }
 0x11c   : > { %v524_v5 = vmax.f32 %v514_v1, 0.0  ;;  %v509_v6 = vadd.f32 %v508_v3, %v405_v60 }
 0x11e   : > { %v523_v9 = vmax.f32 %v509_v6, 0.0  ;;  %878 = vmatprep.subr.mxu1 %v524_v5 }
 0x11f   : > { %879 = vmatpush3.msra.mxu1 %v524_v5 }
 0x120   : > { %880 = vmatprep.subr.mxu1 %v523_v9 }
 0x121   : > { %881 = vmatpush3.msra.mxu1 %v523_v9 }
 0x122   : > { %882 = vmatprep.subr.mxu1 %v522_v11 }
 0x123   : > { %883 = vmatpush3.msra.mxu1 %v522_v11 }
 0x124   : > { %884 = vmatprep.subr.mxu1 %v521_v14 }
 0x125   : > { %885 = vmatpush3.msra.mxu1 %v521_v14 }
 0x126   : > { %886 = vmatprep.subr.mxu1 %v520_v17 }
 0x127   : > { %887 = vmatpush3.msra.mxu1 %v520_v17 }
 0x128   : > { %888 = vmatprep.subr.mxu1 %v519_v19 }
 0x129   : > { %889 = vmatpush3.msra.mxu1 %v519_v19 }
 0x12a   : > { %890 = vmatprep.subr.mxu1 %v518_v20 }
 0x12b   : > { %891 = vmatpush3.msra.mxu1 %v518_v20 }
 0x12c   : > { %892 = vmatprep.subr.mxu1 %v517_v21 }
 0x12d   : > { %893 = vmatpush3.msra.mxu1 %v517_v21 }
 0x12e   : > { %895 = vmatmul.mubr.msk.f32.vlgmr.msra.gmra.mxu1 %vm545_vm0, %v349_v22 }
 0x12f   : > { %897 = vmatprep.mubr.msk.f32.mxu1 %vm545_vm0, %v350_v23 }
 0x132   : > { %898 = vmatmul.mubr.msk.f32.gmra.mxu1 %vm545_vm0, %v351_v24 }
 0x1ee   : > { %v896_v27 = vpop.f32.mrf.mxu1 }
 0x1ef   : > { %v630_v28 = vadd.f32 %v896_v27, %v533_v25 }
 0x1f0   : > { %v624_v29 = vpop.f32.mrf.mxu1 }
 0x1f1   : > { %v644_v30 = vmax.f32 %v630_v28, 0.0  ;;  %v625_v31 = vadd.f32 %v624_v29, %v528_v26 }
 0x1f2   : > { %v899_v33 = vpop.f32.mrf.mxu1 }
 0x1f3   : > { %648 = vst [vmem:[%s331_s28 + $0x8] sm:$0xff] %v644_v30  ;;  %v643_v34 = vmax.f32 %v625_v31, 0.0  ;;  %v640_v35 = vadd.f32 %v899_v33, %v543_v32 }
 0x1f4   : > { %v634_v37 = vpop.f32.mrf.mxu1 }
 0x1f5   : > { %647 = vst [vmem:[%s331_s28] sm:$0xff] %v643_v34  ;;  %v646_v38 = vmax.f32 %v640_v35, 0.0  ;;  %v635_v39 = vadd.f32 %v634_v37, %v538_v36  ;;  %657 = sbr.rel (!%p1094_p6) target bundleno = 514 (0x202), region = 82 }
 0x1f7   : > { %650 = vst [vmem:[%s331_s28 + $0x18] sm:$0xff] %v646_v38  ;;  %v645_v40 = vmax.f32 %v635_v39, 0.0 }
 0x1f9   : > { %649 = vst [vmem:[%s331_s28 + $0x10] sm:$0xff] %v645_v40 }
 0x1fa   : > { %v698_v42 = vld [vmem:[%s331_s28 + $0x8] sm:$0xff] }
 0x1fb   : > { %699 = vst [vmem:[%s661_s9 + $0x10] sm:$0xff] %v698_v42 }
 0x1fc   : > { %v696_v41 = vld [vmem:[%s331_s28] sm:$0xff] }
 0x1fd   : > { %697 = vst [vmem:[%s661_s9] sm:$0xff] %v696_v41 }
 0x1fe   : > { %v702_v44 = vld [vmem:[%s331_s28 + $0x18] sm:$0xff] }
 0x1ff   : > { %703 = vst [vmem:[%s661_s9 + $0x30] sm:$0xff] %v702_v44 }
 0x200   : > { %v700_v43 = vld [vmem:[%s331_s28 + $0x10] sm:$0xff] }
 0x201   : > { %701 = vst [vmem:[%s661_s9 + $0x20] sm:$0xff] %v700_v43 }
 0x202 PF: > { %s15_s24 = sadd.s32 1, %s1013_s24   ;;  %s1265_s18 = smov %s993_s19 }
 0x203   : > { %p12_p12 = scmp.ge.s32.totalorder %s15_s24, 6   ;;  %s1266_s19 = smov %s1102_s8 }
 0x204   : > { %s1267_s20 = smov %s1005_s22  ;;  %s1268_s21 = smov %s1009_s23 }
 0x205   : > { %s1269_s22 = smov %s1272_s25  ;;  %s1270_s23 = smov %s1276_s26 }
 0x206   :  { %14 = sbr.rel (!%p12_p12) target bundleno = 4 (0x4), region = 151 }

</bundles_post_ra>
